<compile_context>
chip_gen: v7x
topology: tpu7x:2x2x1
jax: 0.10.0
libtpu: 0.0.40
codegen_flags: <defaults>
</compile_context>

<pallas_src>
import functools

import jax
import jax.numpy as jnp
from jax import lax
from jax.experimental import pallas as pl
from jax.experimental.pallas import tpu as pltpu

LANE = 128
SUBLANE = 8
TARGET_TILE_ROWS = 8192  # (8192, 128) f32 = 4 MiB per input block


def _vmem_capacity_bytes():
    """Physical per-core VMEM; conservative fallback = v7x per-TC (64 MiB)."""
    try:
        info = pltpu.get_tpu_info()
        cap = getattr(info, "vmem_capacity_bytes", None)
        if cap:
            return int(cap)
    except Exception:
        pass
    return 64 << 20


def _diffusion_loss_kernel(betas_ref, p_ref, t_ref, m_ref, out_ref,
                           *, rows, tile_rows, needs_mask):
    b1 = betas_ref[0]
    b2 = betas_ref[1]

    # Cast after load, BEFORE subtracting (exact for f32, correct for bf16/i8/bool).
    p = p_ref[...].astype(jnp.float32)
    t = t_ref[...].astype(jnp.float32)
    m = m_ref[...].astype(jnp.float32)

    d = p - t
    om = 1.0 - m
    # beta1*(d*m)^2 + beta2*(d*(1-m))^2 == d^2 * (beta1*m^2 + beta2*(1-m)^2)
    # (exact for arbitrary mask values; single partial-sum stream).
    w = b1 * (m * m) + b2 * (om * om)
    contrib = (d * d) * w

    if needs_mask:
        # Partial last block: drop contributions from out-of-range rows.
        # where-select on the FINAL value, so unspecified padding data
        # (even NaN/Inf in any of the three inputs) cannot leak into the sum.
        base = pl.program_id(0) * tile_rows
        row_ids = base + lax.broadcasted_iota(jnp.int32, (tile_rows, LANE), 0)
        contrib = jnp.where(row_ids < rows, contrib, 0.0)

    # First-stage reduction: fold row groups into one (8, 128) vreg.
    # Pure VPU vreg adds; the only cross-lane reduction happens on the tiny
    # partial-sum tensor in the wrapper.
    out_ref[...] = jnp.sum(
        contrib.reshape(tile_rows // SUBLANE, SUBLANE, LANE), axis=0)


def diffusion_loss(pred_noise, target_noise, mask, beta1, beta2, *,
                   tile_rows=None):
    """beta1*MSE(pred*mask, target*mask) + beta2*MSE(pred*(1-mask), target*(1-mask)).

    Inputs may be any float/int/bool dtype; casts happen in-VMEM. For best
    throughput feed pred/target as bf16 and the mask as bool/int8 (this kernel
    is HBM-bandwidth bound, so narrower inputs translate directly to speed).
    """
    assert pred_noise.shape == target_noise.shape == mask.shape
    n = pred_noise.size  # MSELoss 'mean' denominator

    # Flatten (free for contiguous arrays); keep native dtypes (no HBM recopies).
    flat_p = pred_noise.reshape(-1)
    flat_t = target_noise.reshape(-1)
    flat_m = mask.reshape(-1)

    # Pad only when n is not a multiple of one (8, 128) vreg tile (rare for
    # real image tensors). Zero padding contributes 0 to the sum.
    unit = SUBLANE * LANE
    rem = n % unit
    if rem:
        pad = unit - rem
        flat_p = jnp.pad(flat_p, (0, pad))
        flat_t = jnp.pad(flat_t, (0, pad))
        flat_m = jnp.pad(flat_m, (0, pad))

    rows = flat_p.shape[0] // LANE  # always a multiple of 8
    p2 = flat_p.reshape(rows, LANE)
    t2 = flat_t.reshape(rows, LANE)
    m2 = flat_m.reshape(rows, LANE)

    in_bytes_per_row = LANE * (p2.dtype.itemsize + t2.dtype.itemsize
                               + m2.dtype.itemsize)

    vmem_cap = _vmem_capacity_bytes()
    if tile_rows is None:
        # Double-buffered input tiles get at most half of physical VMEM.
        budget = vmem_cap // 2
        max_tile_rows = max(SUBLANE,
                            (budget // (2 * in_bytes_per_row))
                            // SUBLANE * SUBLANE)
        tile_rows = min(TARGET_TILE_ROWS, max_tile_rows, rows)
        # Guarantee >= 2 grid blocks when possible so dual-TC chips (v7x)
        # can shard the "parallel" grid axis instead of leaving a core idle.
        if tile_rows >= rows and rows >= 2 * SUBLANE:
            tile_rows = max(SUBLANE, (rows // 2) // SUBLANE * SUBLANE)
    assert tile_rows % SUBLANE == 0 and 0 < tile_rows <= rows

    num_blocks = pl.cdiv(rows, tile_rows)
    needs_mask = (rows % tile_rows) != 0

    # Explicit scoped-VMEM limit: 2 buffers x 3 input tiles (+ output + margin).
    # Keeps v5e (16 MiB scoped default) from OOMing at large tiles and stays
    # under v7x's 64 MiB physical VMEM.
    tile_bytes = tile_rows * in_bytes_per_row
    out_block_bytes = SUBLANE * LANE * 4
    vmem_needed = 2 * tile_bytes + 2 * out_block_bytes + (4 << 20)
    vmem_limit = int(min(vmem_cap, max(vmem_needed, 32 << 20)))

    # Both betas in one tiny 1-D SMEM ref (avoids padded (1,1) 2-D SMEM slabs).
    betas = jnp.stack([jnp.asarray(beta1, dtype=jnp.float32),
                       jnp.asarray(beta2, dtype=jnp.float32)])

    kernel = functools.partial(
        _diffusion_loss_kernel,
        rows=rows, tile_rows=tile_rows, needs_mask=needs_mask)

    in_nbytes = p2.size * p2.dtype.itemsize \
        + t2.size * t2.dtype.itemsize + m2.size * m2.dtype.itemsize
    cost = pl.CostEstimate(
        flops=10 * rows * LANE,
        transcendentals=0,
        bytes_accessed=in_nbytes + num_blocks * out_block_bytes)

    partials = pl.pallas_call(
        kernel,
        out_shape=jax.ShapeDtypeStruct((num_blocks, SUBLANE, LANE), jnp.float32),
        grid_spec=pltpu.PrefetchScalarGridSpec(
            num_scalar_prefetch=0,
            grid=(num_blocks,),
            in_specs=[
                pl.BlockSpec(memory_space=pltpu.SMEM),               # betas (2,)
                pl.BlockSpec((tile_rows, LANE), lambda i: (i, 0)),   # pred
                pl.BlockSpec((tile_rows, LANE), lambda i: (i, 0)),   # target
                pl.BlockSpec((tile_rows, LANE), lambda i: (i, 0)),   # mask
            ],
            out_specs=pl.BlockSpec((None, SUBLANE, LANE), lambda i: (i, 0, 0)),
        ),
        compiler_params=pltpu.CompilerParams(
            # Each grid step writes its own partial block -> axis is truly
            # parallel; lets megacore / dual-TC (v7x) shard the scan.
            dimension_semantics=("parallel",),
            vmem_limit_bytes=vmem_limit,
        ),
        cost_estimate=cost,
    )(betas, p2, t2, m2)

    # Tiny second-stage reduction (num_blocks * 1024 f32) + mean normalization.
    return jnp.sum(partials) / jnp.float32(n)


def _reference(pred, target, mask, beta1, beta2):
    d = pred.astype(jnp.float32) - target.astype(jnp.float32)
    m = mask.astype(jnp.float32)
    obj = jnp.mean((d * m) ** 2)
    bg = jnp.mean((d * (1.0 - m)) ** 2)
    return beta1 * obj + beta2 * bg


if __name__ == "__main__":
    key = jax.random.PRNGKey(0)
    keys = jax.random.split(key, 12)

    beta1 = jnp.float32(0.7)
    beta2 = jnp.float32(0.3)

    # Case 1: typical NCHW diffusion noise tensor (auto 2-block split).
    B, C, H, W = 2, 4, 16, 16
    pred1 = jax.random.normal(keys[0], (B, C, H, W), dtype=jnp.float32)
    tgt1 = jax.random.normal(keys[1], (B, C, H, W), dtype=jnp.float32)
    msk1 = (jax.random.uniform(keys[2], (B, C, H, W)) > 0.5).astype(jnp.float32)
    loss1 = diffusion_loss(pred1, tgt1, msk1, beta1, beta2)
    jax.block_until_ready(loss1)
    ref1 = _reference(pred1, tgt1, msk1, beta1, beta2)
    assert jnp.allclose(loss1, ref1, rtol=1e-5, atol=1e-5), (loss1, ref1)

    # Case 2: ragged element count (exercises the zero-pad tail path).
    pred2 = jax.random.normal(keys[3], (2, 3, 15, 17), dtype=jnp.float32)
    tgt2 = jax.random.normal(keys[4], (2, 3, 15, 17), dtype=jnp.float32)
    msk2 = (jax.random.uniform(keys[5], (2, 3, 15, 17)) > 0.5).astype(jnp.float32)
    loss2 = diffusion_loss(pred2, tgt2, msk2, beta1, beta2)
    jax.block_until_ready(loss2)
    ref2 = _reference(pred2, tgt2, msk2, beta1, beta2)
    assert jnp.allclose(loss2, ref2, rtol=1e-5, atol=1e-5), (loss2, ref2)

    # Case 3: forced small tile -> partial last block (exercises in-kernel
    # row masking of the unspecified padded region).
    pred3 = jax.random.normal(keys[6], (3, 8, 128), dtype=jnp.float32)
    tgt3 = jax.random.normal(keys[7], (3, 8, 128), dtype=jnp.float32)
    msk3 = (jax.random.uniform(keys[8], (3, 8, 128)) > 0.5).astype(jnp.float32)
    loss3 = diffusion_loss(pred3, tgt3, msk3, beta1, beta2, tile_rows=16)
    jax.block_until_ready(loss3)
    ref3 = _reference(pred3, tgt3, msk3, beta1, beta2)
    assert jnp.allclose(loss3, ref3, rtol=1e-5, atol=1e-5), (loss3, ref3)

    # Case 4: narrow dtypes (bf16 pred/target, bool mask) — the recommended
    # bandwidth-saving configuration; casts happen in-VMEM inside the kernel.
    pred4 = jax.random.normal(keys[9], (2, 4, 16, 16), dtype=jnp.bfloat16)
    tgt4 = jax.random.normal(keys[10], (2, 4, 16, 16), dtype=jnp.bfloat16)
    msk4 = jax.random.uniform(keys[11], (2, 4, 16, 16)) > 0.5  # bool mask
    loss4 = diffusion_loss(pred4, tgt4, msk4, beta1, beta2)
    jax.block_until_ready(loss4)
    ref4 = _reference(pred4, tgt4, msk4, beta1, beta2)
    assert jnp.allclose(loss4, ref4, rtol=1e-5, atol=1e-5), (loss4, ref4)

    print("KERNEL_OK")
</pallas_src>

<mosaic_0001>
module attributes {stable_mosaic.version = 11 : i64} {
  func.func @_diffusion_loss_kernel(%arg0: i32, %arg1: memref<2xf32, #tpu.memory_space<smem>>, %arg2: memref<8x128xf32, #tpu.memory_space<vmem>>, %arg3: memref<8x128xf32, #tpu.memory_space<vmem>>, %arg4: memref<8x128xf32, #tpu.memory_space<vmem>>, %arg5: memref<1x8x128xf32, #tpu.memory_space<vmem>>) attributes {dimension_semantics = [#tpu.dimension_semantics<parallel>], iteration_bounds = array<i64: 2>, scalar_prefetch = 0 : i64, scratch_operands = 0 : i64, tpu.core_type = #tpu.core_type<tc>, window_params = [{transform_indices = @transform_0, window_bounds = array<i64: 2>}, {transform_indices = @transform_1, window_bounds = array<i64: 8, 128>}, {transform_indices = @transform_2, window_bounds = array<i64: 8, 128>}, {transform_indices = @transform_3, window_bounds = array<i64: 8, 128>}, {transform_indices = @transform_4, window_bounds = array<i64: 1, 8, 128>}]} {
    %c0 = arith.constant 0 : index
    %0 = memref.load %arg1[%c0] : memref<2xf32, #tpu.memory_space<smem>>
    %c1 = arith.constant 1 : index
    %1 = memref.load %arg1[%c1] : memref<2xf32, #tpu.memory_space<smem>>
    %c0_0 = arith.constant 0 : index
    %c0_1 = arith.constant 0 : index
    %2 = vector.load %arg2[%c0_0, %c0_1] : memref<8x128xf32, #tpu.memory_space<vmem>>, vector<8x128xf32>
    %c0_2 = arith.constant 0 : index
    %c0_3 = arith.constant 0 : index
    %3 = vector.load %arg3[%c0_2, %c0_3] : memref<8x128xf32, #tpu.memory_space<vmem>>, vector<8x128xf32>
    %c0_4 = arith.constant 0 : index
    %c0_5 = arith.constant 0 : index
    %4 = vector.load %arg4[%c0_4, %c0_5] : memref<8x128xf32, #tpu.memory_space<vmem>>, vector<8x128xf32>
    %5 = arith.subf %2, %3 : vector<8x128xf32>
    %cst = arith.constant 1.000000e+00 : f32
    %6 = vector.broadcast %cst : f32 to vector<8x128xf32>
    %7 = arith.subf %6, %4 : vector<8x128xf32>
    %8 = arith.mulf %4, %4 : vector<8x128xf32>
    %9 = vector.broadcast %0 : f32 to vector<8x128xf32>
    %10 = arith.mulf %9, %8 : vector<8x128xf32>
    %11 = arith.mulf %7, %7 : vector<8x128xf32>
    %12 = vector.broadcast %1 : f32 to vector<8x128xf32>
    %13 = arith.mulf %12, %11 : vector<8x128xf32>
    %14 = arith.addf %10, %13 : vector<8x128xf32>
    %15 = arith.mulf %5, %5 : vector<8x128xf32>
    %16 = arith.mulf %15, %14 : vector<8x128xf32>
    %17 = vector.shape_cast %16 : vector<8x128xf32> to vector<1x8x128xf32>
    %cst_6 = arith.constant dense<0.000000e+00> : vector<8x128xf32>
    %18 = vector.multi_reduction <add>, %17, %cst_6 [0] : vector<1x8x128xf32> to vector<8x128xf32>
    %c0_7 = arith.constant 0 : index
    %c0_8 = arith.constant 0 : index
    %c0_9 = arith.constant 0 : index
    %19 = vector.load %arg5[%c0_7, %c0_8, %c0_9] : memref<1x8x128xf32, #tpu.memory_space<vmem>>, vector<1x8x128xf32>
    %20 = vector.shape_cast %19 : vector<1x8x128xf32> to vector<8x128xf32>
    %21 = vector.shape_cast %18 : vector<8x128xf32> to vector<1x8x128xf32>
    tpu.vector_store %arg5[%c0_7, %c0_8, %c0_9], %21 {strides = array<i32>} : memref<1x8x128xf32, #tpu.memory_space<vmem>>, vector<1x8x128xf32>,
    return
  }
  func.func @transform_0(%arg0: i32) -> i32 {
    %c0_i32 = arith.constant 0 : i32
    %c0_i32_0 = arith.constant 0 : i32
    return %c0_i32 : i32
  }
  func.func @transform_1(%arg0: i32) -> (i32, i32) {
    %c0_i32 = arith.constant 0 : i32
    %c0_i32_0 = arith.constant 0 : i32
    return %arg0, %c0_i32 : i32, i32
  }
  func.func @transform_2(%arg0: i32) -> (i32, i32) {
    %c0_i32 = arith.constant 0 : i32
    %c0_i32_0 = arith.constant 0 : i32
    return %arg0, %c0_i32 : i32, i32
  }
  func.func @transform_3(%arg0: i32) -> (i32, i32) {
    %c0_i32 = arith.constant 0 : i32
    %c0_i32_0 = arith.constant 0 : i32
    return %arg0, %c0_i32 : i32, i32
  }
  func.func @transform_4(%arg0: i32) -> (i32, i32, i32) {
    %c0_i32 = arith.constant 0 : i32
    %c0_i32_0 = arith.constant 0 : i32
    %c0_i32_1 = arith.constant 0 : i32
    return %arg0, %c0_i32, %c0_i32_0 : i32, i32, i32
  }
}

</mosaic_0001>

<bundles_post_ra>
// kernel: tpu_custom_call.1
= control target key start
LH: loop header
LB: loop body
LE: loop exit
PB: predicated region body
PF: predicated region fallthrough
CT: control target
= control target key end

     0   :  { %s1028_s0 = inlined_call_operand.hbm [shape: f32[2], index: 0, kind: input, shape index: {}]   ;;  %s1029_s1 = inlined_call_operand.hbm [shape: f32[16,128], index: 1, kind: input, shape index: {}]   ;;  %s1030_s2 = inlined_call_operand.hbm [shape: f32[16,128], index: 2, kind: input, shape index: {}]   ;;  %s1031_s3 = inlined_call_operand.hbm [shape: f32[16,128], index: 3, kind: input, shape index: {}]   ;;  %s1032_s4 = inlined_call_operand.hbm [shape: f32[2,8,128], index: 4, kind: output, shape index: {}]  }
   0x1   :  { %1041 = sst [smem:[#allocation16_spill]] %s1030_s2 }
   0x2   :  { %9 = vsyncpa [#allocation5], 0 }
   0x3   :  { %10 = vsyncpa [#allocation3], 0 }
   0x4   :  { %12 = vsyncpa [#allocation3 + $0x1], 0 }
   0x5   :  { %13 = vsyncpa [#allocation8], 0 }
   0x6   :  { %15 = vsyncpa [#allocation8 + $0x1], 0 }
   0x7   :  { %16 = vsyncpa [#allocation4], 0 }
   0x8   :  { %18 = vsyncpa [#allocation4 + $0x1], 0  ;;  %s750_s15 = smov 0   ;;  %s752_s16 = smov 0  }
   0x9   :  { %s754_s17 = smov 0   ;;  %s756_s18 = smov 0  }
   0xa LB: > { %s771_s19 = sadd.s32 1, %s718_s18   ;;  %s52_s20 = sadd.s32 1, %s714_s17  ;;  %s718_s18 = sphi %s756_s18, %s1067_s18   ;;  %s714_s17 = sphi %s754_s17, %s1066_s17   ;;  %s710_s16 = sphi %s752_s16, %s1065_s16   ;;  %s706_s15 = sphi %s750_s15, %s1064_s15  }
   0xb   : > { %s49_s21 = ssub.s32 %s718_s18, %s771_s19  ;;  %p1033_p0 = scmp.ne.s32.totalorder %s714_s17, %s710_s16 }
   0xc   : > { %p50_p1 = scmp.eq.s32.totalorder %s49_s21, 0  ;;  %p60_p2 = scmp.eq.s32.totalorder %s718_s18, 0 }
   0xd   : > { %p505_p4 = scmp.lt.s32.totalorder %s718_s18, 2  ;;  %s176_s23 = sand.u32 1, %s714_s17  }
   0xe   : > { %s782_s22 = scalar_select %p50_p1, %s714_s17, %s52_s20  }
   0xf   : > { %p61_p5 = por %p60_p2, %p1033_p0  ;;  %s790_s24 = sshll.u32 %s176_s23, 3 }
  0x10   : > { %1042 = sst [smem:[#allocation15_spill]] %s782_s22  ;;  %s793_s25 = sshll.u32 %s718_s18, 7 }
  0x11   : > { %p795_p6 = pnand %p505_p4, %p61_p5  ;;  %s194_s27 = sand.u32 1, %s718_s18  }
  0x12   : > { %s1044_s2 = sld [smem:[#allocation16_spill]]  ;;  %s198_s5 = scalar_lea.vmem [#allocation7], %s790_s24 }
  0x13   : > { %s1043_s26 = scalar_select %p795_p6, 1, 0 }
  0x14   : > { %s205_s6 = sshll.u32 %s198_s5, 4  ;;  %s809_s7 = scalar_lea.sflag [#allocation8], %s194_s27  ;;  %s807_s6 = int_to_ptr.vmem [resolvable:$true] %s205_s6 }
  0x15   : > { %p815_p8 = pneg %p795_p6 }
  0x18   : > { %s804_s30 = scalar_lea.hbm %s1044_s2, %s793_s25  ;;  %s546_s12 = scalar_lea.hbm %s1044_s2, 256 }
  0x19   : > { %s541_s8 = scalar_lea.hbm %s804_s30, 128  ;;  %p547_p11 = scmp.lt.u32.totalorder %s804_s30, %s1044_s2 }
  0x1a   : > { %p542_p7 = scmp.ne.s32.totalorder %s804_s30, %s541_s8  ;;  %p548_p12 = scmp.lt.u32.totalorder %s546_s12, %s541_s8 }
  0x1b   : > { %p550_p1 = scmp.lt.u32.totalorder %s541_s8, %s804_s30 }
  0x1c   : > { %p544_p9 = pnand %p815_p8, %p542_p7  ;;  %p549_p13 = por %p548_p12, %p547_p11 }
  0x1e   : > { %p545_p10 = pneg %p544_p9  ;;  %p551_p2 = por %p550_p1, %p549_p13 }
  0x20   : > { %p552_p4 = pnand %p551_p2, %p545_p10 }
  0x22   : > { %555 = shalt.err (!%p552_p4)
}
  0x23   : > { %s556_s20 = scalar_lea.vmem %s807_s6, 128  ;;  %s720_s21 = smov [#allocation7]  }
  0x24   : > { %p557_p5 = scmp.ne.s32.totalorder %s807_s6, %s556_s20  ;;  %s561_s27 = sshll.u32 %s720_s21, 4  ;;  %s562_s27 = int_to_ptr.vmem [resolvable:$false] %s561_s27 }
  0x25   : > { %s563_s28 = scalar_lea.vmem %s562_s27, 256  ;;  %p564_p3 = scmp.lt.s32.totalorder %s807_s6, %s562_s27 }
  0x26   : > { %p559_p7 = pnand %p557_p5, %p815_p8  ;;  %p565_p0 = scmp.lt.s32.totalorder %s563_s28, %s556_s20 }
  0x28   : > { %p560_p9 = pneg %p559_p7  ;;  %p566_p11 = por %p565_p0, %p564_p3 }
  0x2a   : > { %p567_p12 = pnand %p566_p11, %p560_p9 }
  0x2c   : > { %570 = shalt.err (!%p567_p12)
}
  0x2d   : > { %496 = dma.hbm_to_vmem [thread:$0]  (!%p795_p6), %s804_s30, 128, %s807_s6, %s809_s7  }
  0x2e   : > { %s840_s29 = sadd.s32 4294967295, %s718_s18   ;;  %s453_s5 = sadd.s32 4294967294, %s718_s18  }
  0x2f   : > { %p65_p0 = scmp.ne.s32.totalorder %s710_s16, %s706_s15  ;;  %p1034_p3 = scmp.eq.s32.totalorder %s840_s29, 0 }
  0x30   : > { %p141_p10 = scmp.eq.s32.totalorder %s840_s29, 1  ;;  %p147_p13 = scmp.eq.s32.totalorder %s453_s5, 1 }
  0x31   : > { %p849_p1 = por %p1034_p3, %p65_p0  ;;  %p454_p2 = scmp.ge.s32.totalorder %s718_s18, 1 }
  0x32   : > { %p1047_p4 = scmp.ne.s32.totalorder %s714_s17, %s710_s16  ;;  %p861_p7 = por %p147_p13, %p65_p0 }
  0x33   : > { %s1046_s8 = scalar_select %p849_p1, 1, 0 }
  0x34   : > { %p857_p5 = por %p141_p10, %p1047_p4  ;;  %p154_p9 = scmp.lt.s32.totalorder %s718_s18, 3 }
  0x35   : > { %s1049_s6 = scalar_select %p861_p7, 1, 0 }
  0x36   : > { %s1048_s30 = scalar_select %p857_p5, 1, 0 }
  0x37   : > { %p866_p11 = pnand %p454_p2, %p154_p9  ;;  %s874_s13 = scalar_lea.hbm %s1029_s1, %s793_s25 }
  0x38   : > { %s180_s14 = scalar_lea.vmem [#allocation6], %s790_s24  ;;  %s177_s21 = scalar_lea.sflag [#allocation3], %s176_s23 }
  0x39   : > { %s1050_s10 = scalar_select %p866_p11, 1, 0 }
  0x3a   : > { %s187_s20 = sshll.u32 %s180_s14, 4  ;;  %s571_s27 = scalar_lea.hbm %s874_s13, 128  ;;  %s188_s20 = int_to_ptr.vmem [resolvable:$true] %s187_s20 }
  0x3b   : > { %p572_p0 = scmp.ne.s32.totalorder %s874_s13, %s571_s27  ;;  %s576_s11 = scalar_lea.hbm %s1029_s1, 256 }
  0x3c   : > { %p577_p2 = scmp.lt.u32.totalorder %s874_s13, %s1029_s1  ;;  %p578_p4 = scmp.lt.u32.totalorder %s576_s11, %s571_s27 }
  0x3d   : > { %p574_p10 = pnand %p572_p0, %p815_p8  ;;  %p580_p3 = scmp.lt.u32.totalorder %s571_s27, %s874_s13 }
  0x3e   : > { %p579_p9 = por %p578_p4, %p577_p2 }
  0x3f   : > { %p575_p13 = pneg %p574_p10 }
  0x40   : > { %p581_p12 = por %p580_p3, %p579_p9 }
  0x42   : > { %p582_p7 = pnand %p581_p12, %p575_p13 }
  0x44   : > { %585 = shalt.err (!%p582_p7)
}
  0x45   : > { %s586_s23 = scalar_lea.vmem %s188_s20, 128  ;;  %s721_s14 = smov [#allocation6]  }
  0x46   : > { %p587_p5 = scmp.ne.s32.totalorder %s188_s20, %s586_s23  ;;  %s591_s22 = sshll.u32 %s721_s14, 4  ;;  %s592_s22 = int_to_ptr.vmem [resolvable:$false] %s591_s22 }
  0x47   : > { %s593_s28 = scalar_lea.vmem %s592_s22, 256  ;;  %p594_p1 = scmp.lt.s32.totalorder %s188_s20, %s592_s22 }
  0x48   : > { %p589_p0 = pnand %p587_p5, %p815_p8  ;;  %p595_p11 = scmp.lt.s32.totalorder %s593_s28, %s586_s23 }
  0x4a   : > { %p590_p10 = pneg %p589_p0  ;;  %p596_p6 = por %p595_p11, %p594_p1 }
  0x4c   : > { %p597_p2 = pnand %p596_p6, %p590_p10 }
  0x4e   : > { %600 = shalt.err (!%p597_p2)
}
  0x4f   : > { %p1051_p4 = scmp.ne.s32.totalorder %s1043_s26, 0  ;;  %p1052_p3 = scmp.eq.s32.totalorder %s840_s29, 0 }
  0x50   : > { %p1053_p5 = scmp.ne.s32.totalorder %s1050_s10, 0  ;;  %s911_s5 = scalar_lea.hbm %s1031_s3, %s793_s25 }
  0x51   : > { %493 = dma.hbm_to_vmem [thread:$0]  (!%p1051_p4), %s874_s13, 128, %s188_s20, %s177_s21  }
  0x52   : > { %p1054_p7 = pneg %p1053_p5  ;;  %s216_s11 = scalar_lea.vmem [#allocation9], %s790_s24 }
  0x53   : > { %s223_s12 = sshll.u32 %s216_s11, 4  ;;  %s601_s13 = scalar_lea.hbm %s1028_s0, 16  ;;  %s914_s12 = int_to_ptr.vmem [resolvable:$true] %s223_s12 }
  0x54   : > { %p903_p12 = pnand %p1054_p7, %p1052_p3  ;;  %p602_p6 = scmp.ne.s32.totalorder %s1028_s0, %s601_s13 }
  0x55   : > { %p608_p9 = scmp.lt.u32.totalorder %s601_s13, %s1028_s0 }
  0x56   : > { %p603_p1 = pneg %p903_p12 }
  0x58   : > { %p604_p11 = pnand %p603_p1, %p602_p6 }
  0x5a   : > { %p605_p13 = pneg %p604_p11 }
  0x5c   : > { %p610_p0 = pnand %p608_p9, %p605_p13 }
  0x5e   : > { %613 = shalt.err (!%p610_p0)
}
  0x5f   : > { %s722_s24 = smov [#allocation2]   ;;  %s614_s11 = scalar_lea.hbm %s911_s5, 128 }
  0x60   : > { %489 = dma.hbm_to_smem (!%p903_p12), %s1028_s0, 16, %s722_s24, [#allocation5]  }
  0x61   : > { %p615_p10 = scmp.ne.s32.totalorder %s911_s5, %s614_s11  ;;  %s619_s13 = scalar_lea.hbm %s1031_s3, 256 }
  0x62   : > { %p620_p7 = scmp.lt.u32.totalorder %s911_s5, %s1031_s3  ;;  %p621_p6 = scmp.lt.u32.totalorder %s619_s13, %s614_s11 }
  0x63   : > { %p617_p2 = pnand %p615_p10, %p815_p8  ;;  %p623_p11 = scmp.lt.u32.totalorder %s614_s11, %s911_s5 }
  0x64   : > { %p622_p1 = por %p621_p6, %p620_p7 }
  0x65   : > { %p618_p3 = pneg %p617_p2 }
  0x66   : > { %p624_p13 = por %p623_p11, %p622_p1 }
  0x68   : > { %p625_p9 = pnand %p624_p13, %p618_p3 }
  0x6a   : > { %628 = shalt.err (!%p625_p9)
}
  0x6b   : > { %s629_s21 = scalar_lea.vmem %s914_s12, 128  ;;  %s723_s28 = smov [#allocation9]  }
  0x6c   : > { %p630_p12 = scmp.ne.s32.totalorder %s914_s12, %s629_s21  ;;  %s634_s22 = sshll.u32 %s723_s28, 4  ;;  %s635_s22 = int_to_ptr.vmem [resolvable:$false] %s634_s22 }
  0x6d   : > { %s636_s24 = scalar_lea.vmem %s635_s22, 256  ;;  %p637_p2 = scmp.lt.s32.totalorder %s914_s12, %s635_s22 }
  0x6e   : > { %p632_p0 = pnand %p630_p12, %p815_p8  ;;  %p638_p5 = scmp.lt.s32.totalorder %s636_s24, %s629_s21 }
  0x70   : > { %p633_p10 = pneg %p632_p0  ;;  %p639_p7 = por %p638_p5, %p637_p2 }
  0x72   : > { %p640_p6 = pnand %p639_p7, %p633_p10 }
  0x74   : > { %643 = shalt.err (!%p640_p6)
}
  0x75   : > { %499 = dma.hbm_to_vmem [thread:$0]  (!%p1051_p4), %s911_s5, 128, %s914_s12, %s809_s7  }
  0x76   : > { %p1056_p3 = scmp.ne.s32.totalorder %s1050_s10, 0 }
  0x77   : > { %p1057_p8 = scmp.eq.s32.totalorder (!%p1056_p3), %s840_s29, 0 }
  0x78   : > { %232 = sbr.rel (%p1056_p3) target bundleno = 164 (0xa4), region = 36 }
  0x7f   : > { %689 = dma.done.wait (%p1057_p8), [#allocation5], 16   ;;  %p1058_p1 = pmov %p1057_p8 }
  0x80   : > { %s961_s9 = sand.u32 1, %s710_s16   ;;  %p1059_p4 = scmp.ne.s32.totalorder %s1046_s8, 0 }
  0x81   : > { %691 = vsyncadd (%p1058_p1), [#allocation5], 4294967280  ;;  %s964_s26 = sshll.u32 %s961_s9, 3  ;;  %s239_s25 = scalar_lea.sflag [#allocation3], %s961_s9 }
  0x82   : > { %s242_s7 = scalar_lea.vmem [#allocation6], %s964_s26 }
  0x83   : > { %693 = dma.done.wait (%p1059_p4), %s239_s25, 128  }
  0x84   : > { %695 = vsyncadd (%p1059_p4), %s239_s25, 4294967168  ;;  %s247_s10 = sand.u32 1, %s840_s29   ;;  %s251_s12 = scalar_lea.vmem [#allocation7], %s964_s26 }
  0x85   : > { %s248_s5 = scalar_lea.sflag [#allocation8], %s247_s10 }
  0x86   : > { %697 = dma.done.wait (%p1059_p4), %s248_s5, 256  }
  0x87   : > { %699 = vsyncadd (%p1059_p4), %s248_s5, 4294967040  ;;  %s260_s27 = scalar_lea.vmem [#allocation9], %s964_s26 }
  0x88   : > { %265 = sfence }
  0x89   : > { %s296_s11 = sld [smem:[#allocation2]]  ;;  %v300_v0 = vld [vmem:[%s260_s27] sm:$0xff]  ;;  %s469_s23 = sld [smem:[#allocation2 + $0x1]]  ;;  %v299_v2 = vld [vmem:[%s251_s12] sm:$0xff] }
  0x8a   : > { %v298_v1 = vld [vmem:[%s242_s7] sm:$0xff]  ;;  %v302_v3 = vsub.f32 1.0, %v300_v0  ;;  %v303_v4 = vmul.f32 %v300_v0, %v300_v0  ;;  %s295_s8 = scalar_lea.vmem [#allocation10], %s964_s26  ;;  %s471_s13 = sshll.u32 %s840_s29, 7 }
  0x8b   : > { %v301_v5 = vsub.f32 %v298_v1, %v299_v2  ;;  %s328_s14 = sshll.u32 %s295_s8, 4  ;;  %s986_s21 = scalar_lea.hbm %s1032_s4, %s471_s13  ;;  %s981_s14 = int_to_ptr.vmem [resolvable:$true] %s328_s14 }
  0x8c   : > { %v306_v6 = vmul.f32 %v302_v3, %v302_v3  ;;  %s315_s28 = scalar_lea.sflag [#allocation4], %s961_s9  ;;  %s644_s22 = scalar_lea.vmem %s981_s14, 128 }
  0x8d   : > { %v310_v11 = vmul.f32 %v301_v5, %v301_v5  ;;  %p645_p5 = scmp.ne.s32.totalorder %s981_s14, %s644_s22  ;;  %p1060_p11 = scmp.ne.s32.totalorder %s1048_s30, 0 }
  0x8e   : > { %s724_s29 = smov [#allocation10]  }
  0x8f   : > { %v304_v7 = vstv %s296_s11  ;;  %v307_v9 = vstv %s469_s23  ;;  %p646_p13 = pnand %p645_p5, %p1060_p11  ;;  %s648_s24 = sshll.u32 %s724_s29, 4  ;;  %s649_s24 = int_to_ptr.vmem [resolvable:$false] %s648_s24 }
  0x90   : > { %v305_v8 = vmul.f32 %v304_v7, %v303_v4  ;;  %v308_v10 = vmul.f32 %v307_v9, %v306_v6  ;;  %s650_s26 = scalar_lea.vmem %s649_s24, 256  ;;  %p651_p12 = scmp.lt.s32.totalorder %s981_s14, %s649_s24 }
  0x91   : > { %p647_p9 = pneg %p646_p13  ;;  %p652_p0 = scmp.lt.s32.totalorder %s650_s26, %s644_s22 }
  0x92   : > { %v309_v12 = vadd.f32 %v308_v10, %v305_v8 }
  0x93   : > { %p653_p10 = por %p652_p0, %p651_p12 }
  0x94   : > { %v311_v13 = vmul.f32 %v310_v11, %v309_v12 }
  0x95   : > { %p654_p2 = pnand %p653_p10, %p647_p9 }
  0x96   : > { %313 = vst [vmem:[%s295_s8] sm:$0xff] %v311_v13 }
  0x97   : > { %657 = shalt.err (!%p654_p2)
}
  0x98   : > { %s658_s9 = scalar_lea.hbm %s986_s21, 128  ;;  %s662_s10 = scalar_lea.hbm %s1032_s4, 256 }
  0x99   : > { %p659_p7 = scmp.ne.s32.totalorder %s986_s21, %s658_s9  ;;  %p663_p8 = scmp.lt.u32.totalorder %s986_s21, %s1032_s4 }
  0x9a   : > { %p664_p1 = scmp.lt.u32.totalorder %s662_s10, %s658_s9  ;;  %p666_p5 = scmp.lt.u32.totalorder %s658_s9, %s986_s21 }
  0x9b   : > { %p660_p6 = pnand %p659_p7, %p1060_p11 }
  0x9c   : > { %p665_p4 = por %p664_p1, %p663_p8 }
  0x9d   : > { %p661_p3 = pneg %p660_p6 }
  0x9e   : > { %p667_p13 = por %p666_p5, %p665_p4 }
  0xa0   : > { %p668_p9 = pnand %p667_p13, %p661_p3 }
  0xa2   : > { %671 = shalt.err (!%p668_p9)
}
  0xa3   : > { %484 = dma.vmem_to_hbm [thread:$0]  (%p1060_p11), %s981_s14, 128, %s986_s21, %s315_s28  }
  0xa4 PF: > { %s340_s27 = sand.u32 1, %s706_s15   ;;  %p1061_p12 = scmp.ne.s32.totalorder %s1049_s6, 0 }
  0xa5   : > { %p1062_p0 = scmp.ge.s32.totalorder %s718_s18, 2  ;;  %s341_s11 = scalar_lea.sflag [#allocation4], %s340_s27 }
  0xa7   : > { %p501_p10 = pnand %p1062_p0, %p1061_p12 }
  0xa9   : > { %701 = dma.done.wait (!%p501_p10), %s341_s11, 128  }
  0xaa   : > { %703 = vsyncadd (!%p501_p10), %s341_s11, 4294967168  ;;  %s1063_s23 = sld [smem:[#allocation15_spill]]  ;;  %p21_p2 = scmp.ge.s32.totalorder %s771_s19, 4  }
  0xab   : > { %s1064_s15 = smov %s710_s16  ;;  %s1065_s16 = smov %s714_s17 }
  0xac   : > { %s1067_s18 = smov %s771_s19  ;;  %23 = sbr.rel (!%p21_p2) target bundleno = 10 (0xa), region = 110 }
  0xb0   : > { %s1066_s17 = smov %s1063_s23 }
  0xb3   :  { %346 = vsyncpa [#allocation3], 1 }
  0xb4   :  { %348 = vsyncpa [#allocation3 + $0x1], 1 }
  0xb5   :  { %349 = vsyncpa [#allocation8], 1 }
  0xb6   :  { %351 = vsyncpa [#allocation8 + $0x1], 1 }
  0xb7   :  { %352 = vsyncpa [#allocation4], 1 }
  0xb8   :  { %354 = vsyncpa [#allocation4 + $0x1], 1 }
  0xb9   :  { %355 = vsyncpa [#allocation5], 1 }
  0xba   :  { %357 = vsyncpa [#allocation5 + $0x1], 1 }

</bundles_post_ra>
